<compile_context>
chip_gen: v7x
topology: tpu7x:2x2x1
jax: 0.10.0
libtpu: 0.0.40
codegen_flags: <defaults>
</compile_context>

<pallas_src>
import math

import jax
import jax.numpy as jnp
from jax.experimental import pallas as pl
from jax.experimental.pallas import tpu as pltpu


def _pick_tile(dim, target, align):
    """Largest tile <= target that is a multiple of `align` and divides `dim`.

    If `dim` is a multiple of `align` this always succeeds (worst case `align`).
    Otherwise the only legal un-padded block is the full dim, which is returned.
    """
    if dim <= target:
        return dim
    t = (min(target, dim) // align) * align
    while t >= align:
        if dim % t == 0:
            return t
        t -= align
    # TODO(synk): very large dims that are not multiples of `align` fall back to a
    # full-dim block; a padded path would be needed to keep those within VMEM limits.
    return dim


# ----------------------------------------------------------------------------
# Linear:  y = x @ w + b   (grid = (M tiles, N tiles, K tiles), K innermost)
# ----------------------------------------------------------------------------
def _linear_kernel_f32out(x_ref, w_ref, b_ref, o_ref):
    # f32 output: accumulate directly into the resident output block (no scratch).
    k = pl.program_id(2)

    @pl.when(k == 0)
    def _():
        o_ref[...] = jnp.broadcast_to(b_ref[...].astype(jnp.float32), o_ref.shape)

    # Native-dtype operands on the MXU, f32 accumulation.
    o_ref[...] += jnp.dot(x_ref[...], w_ref[...], preferred_element_type=jnp.float32)


def _linear_kernel_acc(x_ref, w_ref, b_ref, o_ref, acc_ref):
    # Non-f32 output: f32 VMEM accumulator, cast once at the last K step.
    k = pl.program_id(2)

    @pl.when(k == 0)
    def _():
        acc_ref[...] = jnp.broadcast_to(b_ref[...].astype(jnp.float32), acc_ref.shape)

    acc_ref[...] += jnp.dot(x_ref[...], w_ref[...], preferred_element_type=jnp.float32)

    @pl.when(k == pl.num_programs(2) - 1)
    def _():
        o_ref[...] = acc_ref[...].astype(o_ref.dtype)


def linear(x, w, b, *, tm_target=512, tn_target=512, tk_target=512):
    """x: (M, K), w: (K, N), b: (1, N) -> (M, N) in x.dtype."""
    M, K = x.shape
    K2, N = w.shape
    assert K == K2
    tm = _pick_tile(M, tm_target, 8)
    tn = _pick_tile(N, tn_target, 128)   # 512 target -> 256-aligned when possible
    tk = _pick_tile(K, tk_target, 128)
    grid = (M // tm, N // tn, K // tk)
    out_dtype = x.dtype

    in_specs = [
        pl.BlockSpec((tm, tk), lambda i, j, k: (i, k)),
        pl.BlockSpec((tk, tn), lambda i, j, k: (k, j)),
        pl.BlockSpec((1, tn), lambda i, j, k: (0, j)),
    ]
    out_specs = pl.BlockSpec((tm, tn), lambda i, j, k: (i, j))
    cparams = pltpu.CompilerParams(
        dimension_semantics=("parallel", "parallel", "arbitrary"),
        vmem_limit_bytes=32 * 1024 * 1024,
    )

    if out_dtype == jnp.float32:
        return pl.pallas_call(
            _linear_kernel_f32out,
            out_shape=jax.ShapeDtypeStruct((M, N), out_dtype),
            grid=grid,
            in_specs=in_specs,
            out_specs=out_specs,
            compiler_params=cparams,
        )(x, w, b)
    return pl.pallas_call(
        _linear_kernel_acc,
        out_shape=jax.ShapeDtypeStruct((M, N), out_dtype),
        grid=grid,
        in_specs=in_specs,
        out_specs=out_specs,
        scratch_shapes=[pltpu.VMEM((tm, tn), jnp.float32)],
        compiler_params=cparams,
    )(x, w, b)


# ----------------------------------------------------------------------------
# Head-packed flash attention (online softmax) over (batch, q-tiles, kv-tiles)
# ----------------------------------------------------------------------------
def _flash_attn_kernel(q_ref, k_ref, v_ref, bias_ref, o_ref, m_sc, l_sc, acc_sc):
    ki = pl.program_id(2)

    @pl.when(ki == 0)
    def _():
        m_sc[...] = jnp.full(m_sc.shape, -jnp.inf, jnp.float32)
        l_sc[...] = jnp.zeros_like(l_sc)
        acc_sc[...] = jnp.zeros_like(acc_sc)

    # Blocks: q (h, tq, d_k), k/v (h, tkv, d_k), bias (1, tq, tkv).
    # Native-dtype operands straight to the MXU (no f32 up-cast), f32 accumulation.
    s = jnp.einsum("hqd,hkd->hqk", q_ref[...], k_ref[...],
                   preferred_element_type=jnp.float32)
    # Additive mask bias (0 kept / -1e9 masked), shared across all h heads.
    s = s + bias_ref[...].astype(jnp.float32)

    m_prev = m_sc[...]
    m_new = jnp.maximum(m_prev, s.max(axis=-1, keepdims=True))
    alpha = jnp.exp(m_prev - m_new)                 # (h, tq, 1) side-work only
    p = jnp.exp(s - m_new)
    l_sc[...] = alpha * l_sc[...] + p.sum(axis=-1, keepdims=True)
    acc_sc[...] = alpha * acc_sc[...] + jnp.einsum(
        "hqk,hkd->hqd", p.astype(v_ref.dtype), v_ref[...],
        preferred_element_type=jnp.float32)
    m_sc[...] = m_new

    @pl.when(ki == pl.num_programs(2) - 1)
    def _():
        # Exact divide: once per q tile, negligible cost, tighter accuracy.
        o_ref[...] = (acc_sc[...] / l_sc[...]).astype(o_ref.dtype)


def flash_attention(qh, kh, vh, bias, *, h, tq_target=512, tkv_target=512):
    """qh/kh/vh: (B*h, S, d_k)  (1/sqrt(d_k) already folded into the Q projection);
    bias: (B, Sq, Sk) additive mask bias (bf16).
    One grid step processes all h heads of one batch (mask tile reused h times)."""
    BH, Sq, d_k = qh.shape
    Sk = kh.shape[1]
    B = BH // h
    tq = _pick_tile(Sq, tq_target, 8)
    tkv = _pick_tile(Sk, tkv_target, 128)   # 128-aligned: lane dim of the bias tile
    grid = (B, Sq // tq, Sk // tkv)
    return pl.pallas_call(
        _flash_attn_kernel,
        out_shape=jax.ShapeDtypeStruct((BH, Sq, d_k), qh.dtype),
        grid=grid,
        in_specs=[
            pl.BlockSpec((h, tq, d_k), lambda b, qi, ki: (b, qi, 0)),
            pl.BlockSpec((h, tkv, d_k), lambda b, qi, ki: (b, ki, 0)),
            pl.BlockSpec((h, tkv, d_k), lambda b, qi, ki: (b, ki, 0)),
            pl.BlockSpec((1, tq, tkv), lambda b, qi, ki: (b, qi, ki)),
        ],
        out_specs=pl.BlockSpec((h, tq, d_k), lambda b, qi, ki: (b, qi, 0)),
        scratch_shapes=[
            pltpu.VMEM((h, tq, 1), jnp.float32),     # running max
            pltpu.VMEM((h, tq, 1), jnp.float32),     # running denom
            pltpu.VMEM((h, tq, d_k), jnp.float32),   # output accumulator
        ],
        compiler_params=pltpu.CompilerParams(
            dimension_semantics=("parallel", "parallel", "arbitrary"),
            vmem_limit_bytes=32 * 1024 * 1024,
        ),
    )(qh, kh, vh, bias)


# ----------------------------------------------------------------------------
# Full MultiHeadAttentionBlock forward
# ----------------------------------------------------------------------------
def multi_head_attention_block(q, k, v, mask, params, *, h, dropout_p=0.0):
    B, Sq, D = q.shape
    Sk = k.shape[1]
    assert D % h == 0
    d_k = D // h
    scale = 1.0 / math.sqrt(d_k)

    # Fold the 1/sqrt(d_k) attention scale into the Q projection weights/bias
    # (mathematically identical to scaling the scores; zero per-step cost).
    wq = (params["wq"] * scale).astype(params["wq"].dtype)
    bq = (params["bq"] * scale).astype(params["bq"].dtype)

    if q is k and k is v:
        # Self-attention: fused QKV projection -> single HBM read of the activations.
        w_qkv = jnp.concatenate([wq, params["wk"], params["wv"]], axis=1)
        b_qkv = jnp.concatenate([bq, params["bk"], params["bv"]], axis=1)
        qkv = linear(q.reshape(B * Sq, D), w_qkv, b_qkv)
        Q = qkv[:, :D].reshape(B, Sq, D)
        K = qkv[:, D:2 * D].reshape(B, Sk, D)
        V = qkv[:, 2 * D:].reshape(B, Sk, D)
    else:
        Q = linear(q.reshape(B * Sq, D), wq, bq).reshape(B, Sq, D)
        K = linear(k.reshape(B * Sk, D), params["wk"], params["bk"]).reshape(B, Sk, D)
        V = linear(v.reshape(B * Sk, D), params["wv"], params["bv"]).reshape(B, Sk, D)

    # Head split: (B, S, D) -> (B*h, S, d_k).
    # TODO(synk): fusing these transposes into the BlockSpecs would need a d_k(<128)
    # lane-dim block, which violates the TPU (8,128) block rule; kept as XLA ops.
    Qh = Q.reshape(B, Sq, h, d_k).transpose(0, 2, 1, 3).reshape(B * h, Sq, d_k)
    Kh = K.reshape(B, Sk, h, d_k).transpose(0, 2, 1, 3).reshape(B * h, Sk, d_k)
    Vh = V.reshape(B, Sk, h, d_k).transpose(0, 2, 1, 3).reshape(B * h, Sk, d_k)

    # Additive mask bias in bf16 (half the HBM traffic of an int32 mask); the head
    # dim of the provided mask must be broadcastable (size 1), as in the module.
    # TODO(synk): per-head masks of shape (B, h, Sq, Sk) are not supported here.
    if mask is None:
        bias = jnp.zeros((B, Sq, Sk), jnp.bfloat16)
        # TODO(synk): a maskless kernel variant would skip this DMA entirely.
    else:
        keep = jnp.broadcast_to(jnp.asarray(mask) != 0, (B, 1, Sq, Sk))[:, 0]
        bias = jnp.where(keep, 0.0, -1e9).astype(jnp.bfloat16)

    # TODO(synk): dropout on the attention probabilities (p > 0, training mode) is not
    # implemented; with p == 0 / eval mode it is the identity, which is what we run.
    assert dropout_p == 0.0

    Oh = flash_attention(Qh, Kh, Vh, bias, h=h)

    # Merge heads and apply the output projection.
    O = Oh.reshape(B, h, Sq, d_k).transpose(0, 2, 1, 3).reshape(B * Sq, D)
    return linear(O, params["wo"], params["bo"]).reshape(B, Sq, D)


# ----------------------------------------------------------------------------
# Pure-JAX reference (mirrors the PyTorch module, high-precision matmuls)
# ----------------------------------------------------------------------------
def _reference_mha(q, k, v, mask, params, *, h):
    B, Sq, D = q.shape
    Sk = k.shape[1]
    d_k = D // h
    hi = jax.lax.Precision.HIGHEST

    def lin(x, w, b):
        return jnp.einsum("btd,de->bte", x, w, precision=hi) + b[0]

    Q = lin(q, params["wq"], params["bq"]).reshape(B, Sq, h, d_k).transpose(0, 2, 1, 3)
    K = lin(k, params["wk"], params["bk"]).reshape(B, Sk, h, d_k).transpose(0, 2, 1, 3)
    V = lin(v, params["wv"], params["bv"]).reshape(B, Sk, h, d_k).transpose(0, 2, 1, 3)
    scores = jnp.einsum("bhqd,bhkd->bhqk", Q, K, precision=hi) / math.sqrt(d_k)
    if mask is not None:
        scores = jnp.where(mask == 0, -1e9, scores)
    attn = jax.nn.softmax(scores, axis=-1)
    x = jnp.einsum("bhqk,bhkd->bhqd", attn, V, precision=hi)
    x = x.transpose(0, 2, 1, 3).reshape(B, Sq, D)
    return lin(x, params["wo"], params["bo"])


if __name__ == "__main__":
    key = jax.random.PRNGKey(0)
    B, S, D, H = 2, 8, 32, 4          # batch, seq, d_model, heads  (d_k = 8)
    dropout_p = 0.0

    keys = jax.random.split(key, 9)
    # Self-attention input (q = k = v) -> exercises the fused QKV projection path.
    x = jax.random.normal(keys[0], (B, S, D), jnp.float32)

    def init_linear(kw, kb, d_in, d_out):
        w = jax.random.normal(kw, (d_in, d_out), jnp.float32) / math.sqrt(d_in)
        b = jax.random.normal(kb, (1, d_out), jnp.float32) * 0.05
        return w, b

    wq, bq = init_linear(keys[1], keys[2], D, D)
    wk, bk = init_linear(keys[3], keys[4], D, D)
    wv, bv = init_linear(keys[5], keys[6], D, D)
    wo, bo = init_linear(keys[7], keys[8], D, D)
    params = dict(wq=wq, bq=bq, wk=wk, bk=bk, wv=wv, bv=bv, wo=wo, bo=bo)

    # Causal mask broadcast over batch and heads (mask == 0 -> -1e9, as in the module).
    mask = jnp.tril(jnp.ones((S, S), jnp.int32))[None, None]

    out = multi_head_attention_block(x, x, x, mask, params, h=H, dropout_p=dropout_p)
    out = jax.block_until_ready(out)

    ref = _reference_mha(x, x, x, mask, params, h=H)
    assert out.shape == (B, S, D) and out.dtype == x.dtype
    # Tolerance covers MXU default-precision matmuls.
    assert jnp.allclose(out, ref, atol=2e-2, rtol=2e-2), float(jnp.max(jnp.abs(out - ref)))
    print("KERNEL_OK")
</pallas_src>

<mosaic_0001>
module attributes {stable_mosaic.version = 11 : i64} {
  func.func @_linear_kernel_f32out(%arg0: i32, %arg1: i32, %arg2: i32, %arg3: memref<16x32xf32, #tpu.memory_space<vmem>>, %arg4: memref<32x96xf32, #tpu.memory_space<vmem>>, %arg5: memref<1x96xf32, #tpu.memory_space<vmem>>, %arg6: memref<16x96xf32, #tpu.memory_space<vmem>>) attributes {dimension_semantics = [#tpu.dimension_semantics<parallel>, #tpu.dimension_semantics<parallel>, #tpu.dimension_semantics<arbitrary>], iteration_bounds = array<i64: 1, 1, 1>, scalar_prefetch = 0 : i64, scratch_operands = 0 : i64, tpu.core_type = #tpu.core_type<tc>, window_params = [{transform_indices = @transform_0, window_bounds = array<i64: 16, 32>}, {transform_indices = @transform_1, window_bounds = array<i64: 32, 96>}, {transform_indices = @transform_2, window_bounds = array<i64: 1, 96>}, {transform_indices = @transform_3, window_bounds = array<i64: 16, 96>}]} {
    %c0_i32 = arith.constant 0 : i32
    %0 = arith.cmpi eq, %arg2, %c0_i32 : i32
    %1 = arith.extui %0 : i1 to i32
    %c0_i32_0 = arith.constant 0 : i32
    %2 = arith.cmpi ne, %1, %c0_i32_0 : i32
    scf.if %2 {
      %c0_8 = arith.constant 0 : index
      %c0_9 = arith.constant 0 : index
      %9 = vector.load %arg5[%c0_8, %c0_9] : memref<1x96xf32, #tpu.memory_space<vmem>>, vector<1x96xf32>
      %10 = vector.shape_cast %9 : vector<1x96xf32> to vector<1x96xf32>
      %11 = vector.broadcast %10 : vector<1x96xf32> to vector<16x96xf32>
      %c0_10 = arith.constant 0 : index
      %c0_11 = arith.constant 0 : index
      %12 = vector.load %arg6[%c0_10, %c0_11] : memref<16x96xf32, #tpu.memory_space<vmem>>, vector<16x96xf32>
      tpu.vector_store %arg6[%c0_10, %c0_11], %11 {strides = array<i32>} : memref<16x96xf32, #tpu.memory_space<vmem>>, vector<16x96xf32>,
    } else {
    }
    %c0 = arith.constant 0 : index
    %c0_1 = arith.constant 0 : index
    %3 = vector.load %arg6[%c0, %c0_1] : memref<16x96xf32, #tpu.memory_space<vmem>>, vector<16x96xf32>
    %c0_2 = arith.constant 0 : index
    %c0_3 = arith.constant 0 : index
    %4 = vector.load %arg3[%c0_2, %c0_3] : memref<16x32xf32, #tpu.memory_space<vmem>>, vector<16x32xf32>
    %c0_4 = arith.constant 0 : index
    %c0_5 = arith.constant 0 : index
    %5 = vector.load %arg4[%c0_4, %c0_5] : memref<32x96xf32, #tpu.memory_space<vmem>>, vector<32x96xf32>
    %cst = arith.constant dense<0.000000e+00> : vector<16x96xf32>
    %6 = tpu.matmul %4, %5, %cst {dimension_numbers = #tpu.dot_dimension_numbers<[1], [0], [0], [1], [0, 0, 1, 1], [], []>} : vector<16x32xf32>, vector<32x96xf32>, vector<16x96xf32> -> vector<16x96xf32>
    %7 = arith.addf %3, %6 : vector<16x96xf32>
    %c0_6 = arith.constant 0 : index
    %c0_7 = arith.constant 0 : index
    %8 = vector.load %arg6[%c0_6, %c0_7] : memref<16x96xf32, #tpu.memory_space<vmem>>, vector<16x96xf32>
    tpu.vector_store %arg6[%c0_6, %c0_7], %7 {strides = array<i32>} : memref<16x96xf32, #tpu.memory_space<vmem>>, vector<16x96xf32>,
    return
  }
  func.func @transform_0(%arg0: i32, %arg1: i32, %arg2: i32) -> (i32, i32) {
    %c0_i32 = arith.constant 0 : i32
    return %arg0, %arg2 : i32, i32
  }
  func.func @transform_1(%arg0: i32, %arg1: i32, %arg2: i32) -> (i32, i32) {
    %c0_i32 = arith.constant 0 : i32
    return %arg2, %arg1 : i32, i32
  }
  func.func @transform_2(%arg0: i32, %arg1: i32, %arg2: i32) -> (i32, i32) {
    %c0_i32 = arith.constant 0 : i32
    %c0_i32_0 = arith.constant 0 : i32
    return %c0_i32, %arg1 : i32, i32
  }
  func.func @transform_3(%arg0: i32, %arg1: i32, %arg2: i32) -> (i32, i32) {
    %c0_i32 = arith.constant 0 : i32
    return %arg0, %arg1 : i32, i32
  }
}

</mosaic_0001>

<bundles_post_ra>
// kernel: tpu_custom_call.1
= control target key start
LH: loop header
LB: loop body
LE: loop exit
PB: predicated region body
PF: predicated region fallthrough
CT: control target
= control target key end

     0   :  { %8 = vsyncpa [#allocation3], 0  ;;  %s354_s0 = inlined_call_operand.hbm [shape: f32[16,32], index: 0, kind: input, shape index: {}]   ;;  %s355_s1 = inlined_call_operand.hbm [shape: f32[32,96], index: 1, kind: input, shape index: {}]   ;;  %s356_s2 = inlined_call_operand.vmem [shape: f32[1,96], index: 2, kind: input, shape index: {}]   ;;  %s357_s3 = inlined_call_operand.hbm [shape: f32[16,96], index: 3, kind: output, shape index: {}]  }
   0x1   :  { %9 = vsyncpa [#allocation6], 0 }
   0x2   :  { %10 = vsyncpa [#allocation4], 0  ;;  %s275_s12 = smov [#allocation2]   ;;  %s203_s16 = scalar_lea.hbm %s354_s0, 256 }
   0x3   :  { %s16_s13 = sshll.u32 %s275_s12, 4  ;;  %p204_p0 = scmp.ne.s32.totalorder %s354_s0, %s203_s16  ;;  %s17_s13 = int_to_ptr.vmem [resolvable:$true] %s16_s13 }
   0x4   :  { %p207_p1 = scmp.lt.u32.totalorder %s203_s16, %s354_s0 }
   0x6   :  { %p209_p2 = pnand %p207_p1, %p204_p0 }
   0x8   :  { %212 = shalt.err (!%p209_p2)
}
   0x9   :  { %s213_s21 = scalar_lea.vmem %s17_s13, 256  ;;  %p218_p4 = scmp.lt.s32.totalorder %s17_s13, %s17_s13 }
   0xa   :  { %p214_p3 = scmp.ne.s32.totalorder %s17_s13, %s213_s21  ;;  %p219_p5 = scmp.lt.s32.totalorder %s213_s21, %s213_s21 }
   0xc   :  { %p220_p6 = por %p219_p5, %p218_p4 }
   0xe   :  { %p221_p7 = pnand %p220_p6, %p214_p3 }
  0x10   :  { %224 = shalt.err (!%p221_p7)
}
  0x11   :  { %s276_s22 = smov 128   ;;  %s277_s23 = smov 8  }
  0x12   :  { %22 = dma.hbm_to_vmem [thread:$0]  %s354_s0, 256, %s17_s13, [#allocation3], %s276_s22, %s276_s22, %s277_s23  }
  0x13   :  { %s278_s26 = smov [#allocation5]   ;;  %s225_s30 = scalar_lea.hbm %s355_s1, 512 }
  0x14   :  { %s28_s27 = sshll.u32 %s278_s26, 4  ;;  %p226_p8 = scmp.ne.s32.totalorder %s355_s1, %s225_s30  ;;  %s29_s27 = int_to_ptr.vmem [resolvable:$true] %s28_s27 }
  0x15   :  { %p229_p9 = scmp.lt.u32.totalorder %s225_s30, %s355_s1 }
  0x17   :  { %p231_p10 = pnand %p229_p9, %p226_p8 }
  0x19   :  { %234 = shalt.err (!%p231_p10)
}
  0x1a   :  { %s235_s8 = scalar_lea.vmem %s29_s27, 512  ;;  %p240_p12 = scmp.lt.s32.totalorder %s29_s27, %s29_s27 }
  0x1b   :  { %p236_p11 = scmp.ne.s32.totalorder %s29_s27, %s235_s8  ;;  %p241_p13 = scmp.lt.s32.totalorder %s235_s8, %s235_s8 }
  0x1d   :  { %p242_p0 = por %p241_p13, %p240_p12 }
  0x1f   :  { %p243_p1 = pnand %p242_p0, %p236_p11 }
  0x21   :  { %246 = shalt.err (!%p243_p1)
}
  0x22   :  { %34 = dma.hbm_to_vmem [thread:$0]  %s355_s1, 512, %s29_s27, [#allocation6], %s276_s22, %s276_s22, %s277_s23  }
  0x23   :  { %269 = dma.done.wait [#allocation3], 256  }
  0x24   :  { %270 = vsyncadd [#allocation3], 4294967040 }
  0x25   :  { %271 = dma.done.wait [#allocation6], 512  }
  0x26   :  { %272 = vsyncadd [#allocation6], 4294966784  ;;  %vm65_vm0 = vcmask 261120   ;;  %v61_v0 = vld [vmem:[#allocation5] sm:$0xff]  ;;  %v62_v1 = vld [vmem:[#allocation5 + $0x8] sm:$0xff]  ;;  %vm54_vm1 = vcmask 785408  }
  0x27   :  { %v63_v2 = vld [vmem:[#allocation5 + $0x10] sm:$0xff]  ;;  %v190_v3 = vpack.c.bf16 %v62_v1, %v61_v0  ;;  %v64_v4 = vld [vmem:[#allocation5 + $0x18] sm:$0xff]  ;;  %s279_s1 = smov [#allocation7]  }
  0x28   :  { %v59_v5 = vld [vmem:[#allocation2] sm:$0xff]  ;;  %v194_v6 = vpack.c.bf16 %v64_v4, %v63_v2  ;;  %v60_v8 = vld [vmem:[#allocation2 + $0x8] sm:$0xff]  ;;  %s157_s12 = sshll.u32 %s279_s1, 4  ;;  %s158_s12 = int_to_ptr.vmem [resolvable:$true] %s157_s12 }
  0x29   :  { %187 = vmatprep.mubr.msk.f32.mxu0 %vm65_vm0, %v59_v5  ;;  %v170_v7 = vld [vmem:[%s356_s2] ss:$0 sm:$0xff]  ;;  %191 = vmatprep.subr.bf16.mxu0 %v190_v3  ;;  %s247_s2 = scalar_lea.vmem %s158_s12, 256  ;;  %p252_p3 = scmp.lt.s32.totalorder %s158_s12, %s158_s12 }
  0x2a   :  { %56 = vst.msk [vmem:[#allocation7 + $0x8] sm:$0xff] %vm54_vm1, %v170_v7  ;;  %55 = vst.msk [vmem:[#allocation7] sm:$0xff] %vm54_vm1, %v170_v7  ;;  %193 = vmatpush3.bf16.msra.mxu0 %v190_v3  ;;  %p248_p2 = scmp.ne.s32.totalorder %s158_s12, %s247_s2  ;;  %p253_p4 = scmp.lt.s32.totalorder %s247_s2, %s247_s2 }
  0x2b   :  { %195 = vmatprep.subr.bf16.mxu0 %v194_v6 }
  0x2c   :  { %p254_p5 = por %p253_p4, %p252_p3 }
  0x2e   :  { %197 = vmatpush3.bf16.msra.mxu0 %v194_v6  ;;  %p255_p6 = pnand %p254_p5, %p248_p2 }
  0x31   :  { %188 = vmatmul.mubr.msk.f32.vlgmr.msra.gmra.mrb[0].mxu0 %vm65_vm0, %v60_v8  ;;  %v58_v9 = vld [vmem:[#allocation7 + $0x8] sm:$0xff]  ;;  %v57_v10 = vld [vmem:[#allocation7] sm:$0xff] }
 0x104   :  { %v189_v11 = vpop.f32.mrb[0].mxu0 }
 0x105   :  { %v148_v12 = vadd.f32 %v189_v11, %v58_v9  ;;  %v138_v13 = vpop.f32.mrb[1].mxu0 }
 0x106   :  { %v147_v14 = vadd.f32 %v138_v13, %v57_v10 }
 0x107   :  { %151 = vst.msk [vmem:[#allocation7 + $0x8] sm:$0xff] %vm54_vm1, %v148_v12 }
 0x108   :  { %150 = vst.msk [vmem:[#allocation7] sm:$0xff] %vm54_vm1, %v147_v14 }
 0x109   :  { %258 = shalt.err (!%p255_p6)
}
 0x10a   :  { %s259_s15 = scalar_lea.hbm %s357_s3, 256 }
 0x10b   :  { %p260_p7 = scmp.ne.s32.totalorder %s357_s3, %s259_s15  ;;  %p263_p8 = scmp.lt.u32.totalorder %s259_s15, %s357_s3 }
 0x10d   :  { %p265_p9 = pnand %p263_p8, %p260_p7 }
 0x10f   :  { %268 = shalt.err (!%p265_p9)
}
 0x110   :  { %163 = dma.vmem_to_hbm [thread:$0]  %s158_s12, 256, %s357_s3, [#allocation4], %s276_s22, %s276_s22, %s277_s23  }
 0x111   :  { %273 = dma.done.wait [#allocation4], 256  }
 0x112   :  { %274 = vsyncadd [#allocation4], 4294967040 }
 0x113   :  { %167 = vsyncpa [#allocation3], 1 }
 0x114   :  { %168 = vsyncpa [#allocation6], 1 }
 0x115   :  { %169 = vsyncpa [#allocation4], 1 }

</bundles_post_ra>
